<compile_context>
chip_gen: v6e
topology: v6e:2x2x1
jax: 0.10.0
libtpu: 0.0.40
codegen_flags: <defaults>
</compile_context>

<pallas_src>
import functools

import jax
import jax.numpy as jnp
from jax import lax
from jax.experimental import pallas as pl
from jax.experimental.pallas import tpu as pltpu


def _round_up(x, m):
    return (x + m - 1) // m * m


def dice_ce_loss(pred_nchw, target_nhw, num_classes, *, tile=65536):
    """Pallas implementation of DiceCELoss(num_classes, dims=2).forward."""
    N, C, H, W = pred_nchw.shape
    assert C == num_classes
    HW = H * W
    eps = 1e-6

    # Free, layout-preserving reshapes (no transpose, no pad -> single HBM pass).
    pred = pred_nchw.reshape(N, C, HW)                    # keep input dtype
    tgt = target_nhw.reshape(N, 1, HW).astype(jnp.int32)

    # ---- pixel tiling -------------------------------------------------------
    # Big lane-dense tiles amortize the ~0.35us per-grid-step overhead; cap the
    # double-buffered input footprint (~24 MiB) so the same tile fits v7x's
    # 64 MiB VMEM as well as v5e/v6e.
    itemsize = jnp.dtype(pred.dtype).itemsize
    bytes_per_pixel = C * itemsize + 4                    # logits tile + label tile
    max_tile_by_vmem = max(512, ((24 << 20) // (2 * bytes_per_pixel)) // 128 * 128)
    tile_eff = min(tile, max_tile_by_vmem, _round_up(HW, 128))
    tile_eff = max(128, _round_up(tile_eff, 128))

    # Per-chunk fusion width (lanes); chunk must divide tile_eff.
    chunk_target = 1024 if C <= 8 else 512
    if tile_eff > chunk_target:
        chunk = chunk_target
        tile_eff = (tile_eff // chunk) * chunk            # keep tile a multiple of chunk
    else:
        chunk = tile_eff
    n_inner = tile_eff // chunk
    num_tiles = pl.cdiv(HW, tile_eff)

    # Split the pixel-tile axis in two when the batch axis alone cannot occupy
    # both v7x TensorCores.
    n_split = 2 if (N % 2 == 1 and num_tiles >= 2) else 1
    tiles_per_split = pl.cdiv(num_tiles, n_split)
    overhang = n_split * tiles_per_split != num_tiles     # fully-masked extra tiles
    ragged = (HW % tile_eff != 0) or overhang

    def fold128(v):
        # (R, chunk) -> (R, 128): pairwise tree of aligned 128-lane adds
        # (independent VPU adds; no cross-lane XLU reduce, no layout change).
        parts = [v[:, k * 128:(k + 1) * 128] for k in range(v.shape[1] // 128)]
        while len(parts) > 1:
            nxt = [parts[i] + parts[i + 1] for i in range(0, len(parts) - 1, 2)]
            if len(parts) % 2:
                nxt.append(parts[-1])
            parts = nxt
        return parts[0]

    def kernel(pred_ref, tgt_ref, inter_ref, union_ref, ce_ref):
        s = pl.program_id(0)
        j = pl.program_id(2)
        g = s * tiles_per_split + j                       # global pixel-tile index

        @pl.when(j == 0)
        def _():
            inter_ref[...] = jnp.zeros_like(inter_ref)
            union_ref[...] = jnp.zeros_like(union_ref)
            ce_ref[...] = jnp.zeros_like(ce_ref)

        cls_ids = lax.broadcasted_iota(jnp.int32, (C, 1), 0)

        def run_tile(masked):
            inter_acc = jnp.zeros((C, 128), jnp.float32)
            union_acc = jnp.zeros((C, 128), jnp.float32)
            ce_acc = jnp.zeros((1, 128), jnp.float32)
            for k in range(n_inner):                      # static unroll, static slices
                lo, hi = k * chunk, (k + 1) * chunk
                x = pred_ref[:, lo:hi].astype(jnp.float32)      # (C, chunk) logits
                t = tgt_ref[:, lo:hi]                           # (1, chunk) labels

                # Numerically stable softmax over the class (sublane) axis.
                m = jnp.max(x, axis=0, keepdims=True)
                xs = x - m
                e = jnp.exp(xs)
                denom = jnp.sum(e, axis=0, keepdims=True)
                inv = pl.reciprocal(denom, approx=True)         # EUP vrcp
                inv = inv * (2.0 - denom * inv)                 # one Newton step
                p = e * inv                                     # softmax probs

                oh = cls_ids == t                               # (C, chunk) bool one-hot
                # CE per pixel: -log_softmax[target] = log(denom) - xs[target].
                xs_t = jnp.sum(jnp.where(oh, xs, 0.0), axis=0, keepdims=True)
                ce_pix = jnp.log(denom) - xs_t                  # (1, chunk)

                inter_c = jnp.where(oh, p, 0.0)                 # p * one_hot
                union_c = jnp.where(oh, p + 1.0, p)             # p + one_hot

                if masked:
                    # Select (not multiply): the ragged tail holds garbage logits
                    # that can be inf/NaN; 0*inf would poison the sums.
                    lane = lax.broadcasted_iota(jnp.int32, (1, chunk), 1)
                    valid = (g * tile_eff + lo + lane) < HW
                    inter_c = jnp.where(valid, inter_c, 0.0)
                    union_c = jnp.where(valid, union_c, 0.0)
                    ce_pix = jnp.where(valid, ce_pix, 0.0)

                inter_acc = inter_acc + fold128(inter_c)
                union_acc = union_acc + fold128(union_c)
                ce_acc = ce_acc + fold128(ce_pix)

            inter_ref[...] += inter_acc
            union_ref[...] += union_acc
            ce_ref[...] += ce_acc

        if ragged:
            # Only the trailing pixel tile (and any overhang tile from the split)
            # needs masking; all full tiles take the cheap unmasked path.
            full_tile = (g + 1) * tile_eff <= HW

            @pl.when(full_tile)
            def _():
                run_tile(masked=False)

            @pl.when(jnp.logical_not(full_tile))
            def _():
                run_tile(masked=True)
        else:
            run_tile(masked=False)

    def in_idx(s, n, j):
        g = s * tiles_per_split + j
        if overhang:
            g = jnp.minimum(g, num_tiles - 1)   # clamp the DMA; kernel fully masks it
        return (n, 0, g)

    cls_out = pl.BlockSpec((pl.Squeezed(), pl.Squeezed(), C, 128),
                           lambda s, n, j: (s, n, 0, 0))
    ce_out = pl.BlockSpec((pl.Squeezed(), pl.Squeezed(), 1, 128),
                          lambda s, n, j: (s, n, 0, 0))

    in_tile_bytes = tile_eff * bytes_per_pixel
    vmem_limit = int(min(100 << 20, max(16 << 20, 4 * in_tile_bytes + (8 << 20))))

    inter_p, union_p, ce_p = pl.pallas_call(
        kernel,
        out_shape=(
            jax.ShapeDtypeStruct((n_split, N, C, 128), jnp.float32),  # sum(p*onehot)
            jax.ShapeDtypeStruct((n_split, N, C, 128), jnp.float32),  # sum(p)+sum(onehot)
            jax.ShapeDtypeStruct((n_split, N, 1, 128), jnp.float32),  # sum CE
        ),
        grid_spec=pltpu.PrefetchScalarGridSpec(
            num_scalar_prefetch=0,
            grid=(n_split, N, tiles_per_split),
            in_specs=[
                pl.BlockSpec((pl.Squeezed(), C, tile_eff), in_idx),
                pl.BlockSpec((pl.Squeezed(), 1, tile_eff), in_idx),
            ],
            out_specs=[cls_out, cls_out, ce_out],
        ),
        compiler_params=pltpu.CompilerParams(
            dimension_semantics=("parallel", "parallel", "arbitrary"),
            vmem_limit_bytes=vmem_limit),
    )(pred, tgt)

    # Tiny finalization in plain JAX (a few hundred floats).
    inter = jnp.sum(inter_p, axis=(0, 1, 3))              # (C,)
    union = jnp.sum(union_p, axis=(0, 1, 3))              # (C,)
    ce_sum = jnp.sum(ce_p)

    dice_score = (2.0 * inter + eps) / (union + eps)
    dice_loss = jnp.mean(1.0 - dice_score)
    ce_loss = ce_sum / float(N * HW)
    return 0.5 * dice_loss + 0.5 * ce_loss


def dice_ce_loss_ref(pred_nchw, target_nhw, num_classes):
    """Pure-JAX reference mirroring the PyTorch module (dims=2)."""
    eps = 1e-6
    p = jax.nn.softmax(pred_nchw.astype(jnp.float32), axis=1)   # (N, C, H, W)
    oh = jax.nn.one_hot(target_nhw, num_classes, axis=-1)       # (N, H, W, C)
    oh = jnp.transpose(oh, (0, 3, 1, 2)).astype(jnp.float32)    # (N, C, H, W)
    inter = jnp.sum(p * oh, axis=(0, 2, 3))
    union = jnp.sum(p, axis=(0, 2, 3)) + jnp.sum(oh, axis=(0, 2, 3))
    dice_score = (2.0 * inter + eps) / (union + eps)
    dice_loss = jnp.mean(1.0 - dice_score)
    logsm = jax.nn.log_softmax(pred_nchw.astype(jnp.float32), axis=1)
    ce = -jnp.mean(jnp.sum(logsm * oh, axis=1))
    return 0.5 * dice_loss + 0.5 * ce


if __name__ == "__main__":
    num_classes = 4
    N, C, H, W = 2, num_classes, 16, 16

    key = jax.random.PRNGKey(0)
    k_pred, k_tgt = jax.random.split(key)
    pred = jax.random.normal(k_pred, (N, C, H, W), dtype=jnp.float32)
    target = jax.random.randint(k_tgt, (N, H, W), 0, num_classes, dtype=jnp.int32)

    loss_fn = jax.jit(functools.partial(dice_ce_loss, num_classes=num_classes))
    loss = jax.block_until_ready(loss_fn(pred, target))

    ref = jax.block_until_ready(dice_ce_loss_ref(pred, target, num_classes))
    assert jnp.allclose(loss, ref, rtol=1e-5, atol=1e-5), (loss, ref)

    print("KERNEL_OK")
</pallas_src>

<mosaic_0001>
module attributes {stable_mosaic.version = 11 : i64} {
  func.func @kernel(%arg0: i32, %arg1: i32, %arg2: i32, %arg3: memref<1x4x256xf32, #tpu.memory_space<vmem>>, %arg4: memref<1x1x256xi32, #tpu.memory_space<vmem>>, %arg5: memref<1x1x4x128xf32, #tpu.memory_space<vmem>>, %arg6: memref<1x1x4x128xf32, #tpu.memory_space<vmem>>, %arg7: memref<1x1x1x128xf32, #tpu.memory_space<vmem>>) attributes {dimension_semantics = [#tpu.dimension_semantics<parallel>, #tpu.dimension_semantics<parallel>, #tpu.dimension_semantics<arbitrary>], iteration_bounds = array<i64: 1, 2, 1>, scalar_prefetch = 0 : i64, scratch_operands = 0 : i64, tpu.core_type = #tpu.core_type<tc>, window_params = [{transform_indices = @transform_0, window_bounds = array<i64: 1, 4, 256>}, {transform_indices = @transform_1, window_bounds = array<i64: 1, 1, 256>}, {transform_indices = @transform_2, window_bounds = array<i64: 1, 1, 4, 128>}, {transform_indices = @transform_3, window_bounds = array<i64: 1, 1, 4, 128>}, {transform_indices = @transform_4, window_bounds = array<i64: 1, 1, 1, 128>}]} {
    %c0_i32 = arith.constant 0 : i32
    %0 = arith.cmpi eq, %arg2, %c0_i32 : i32
    %1 = arith.extui %0 : i1 to i32
    %c0_i32_0 = arith.constant 0 : i32
    %2 = arith.cmpi ne, %1, %c0_i32_0 : i32
    scf.if %2 {
      %cst_39 = arith.constant 0.000000e+00 : f32
      %69 = vector.broadcast %cst_39 : f32 to vector<4x128xf32>
      %c0_40 = arith.constant 0 : index
      %c0_41 = arith.constant 0 : index
      %c0_42 = arith.constant 0 : index
      %c0_43 = arith.constant 0 : index
      %70 = vector.load %arg5[%c0_40, %c0_41, %c0_42, %c0_43] : memref<1x1x4x128xf32, #tpu.memory_space<vmem>>, vector<1x1x4x128xf32>
      %71 = vector.shape_cast %70 : vector<1x1x4x128xf32> to vector<4x128xf32>
      %72 = vector.shape_cast %69 : vector<4x128xf32> to vector<1x1x4x128xf32>
      tpu.vector_store %arg5[%c0_40, %c0_41, %c0_42, %c0_43], %72 {strides = array<i32>} : memref<1x1x4x128xf32, #tpu.memory_space<vmem>>, vector<1x1x4x128xf32>,
      %cst_44 = arith.constant 0.000000e+00 : f32
      %73 = vector.broadcast %cst_44 : f32 to vector<4x128xf32>
      %c0_45 = arith.constant 0 : index
      %c0_46 = arith.constant 0 : index
      %c0_47 = arith.constant 0 : index
      %c0_48 = arith.constant 0 : index
      %74 = vector.load %arg6[%c0_45, %c0_46, %c0_47, %c0_48] : memref<1x1x4x128xf32, #tpu.memory_space<vmem>>, vector<1x1x4x128xf32>
      %75 = vector.shape_cast %74 : vector<1x1x4x128xf32> to vector<4x128xf32>
      %76 = vector.shape_cast %73 : vector<4x128xf32> to vector<1x1x4x128xf32>
      tpu.vector_store %arg6[%c0_45, %c0_46, %c0_47, %c0_48], %76 {strides = array<i32>} : memref<1x1x4x128xf32, #tpu.memory_space<vmem>>, vector<1x1x4x128xf32>,
      %cst_49 = arith.constant 0.000000e+00 : f32
      %77 = vector.broadcast %cst_49 : f32 to vector<1x128xf32>
      %c0_50 = arith.constant 0 : index
      %c0_51 = arith.constant 0 : index
      %c0_52 = arith.constant 0 : index
      %c0_53 = arith.constant 0 : index
      %78 = vector.load %arg7[%c0_50, %c0_51, %c0_52, %c0_53] : memref<1x1x1x128xf32, #tpu.memory_space<vmem>>, vector<1x1x1x128xf32>
      %79 = vector.shape_cast %78 : vector<1x1x1x128xf32> to vector<1x128xf32>
      %80 = vector.shape_cast %77 : vector<1x128xf32> to vector<1x1x1x128xf32>
      tpu.vector_store %arg7[%c0_50, %c0_51, %c0_52, %c0_53], %80 {strides = array<i32>} : memref<1x1x1x128xf32, #tpu.memory_space<vmem>>, vector<1x1x1x128xf32>,
    } else {
    }
    %3 = tpu.iota {dimensions = array<i32: 0>} : vector<4x1xi32>
    %cst = arith.constant 0.000000e+00 : f32
    %4 = vector.broadcast %cst : f32 to vector<4x128xf32>
    %cst_1 = arith.constant 0.000000e+00 : f32
    %5 = vector.broadcast %cst_1 : f32 to vector<4x128xf32>
    %cst_2 = arith.constant 0.000000e+00 : f32
    %6 = vector.broadcast %cst_2 : f32 to vector<1x128xf32>
    %c0 = arith.constant 0 : index
    %c0_3 = arith.constant 0 : index
    %c0_4 = arith.constant 0 : index
    %7 = vector.load %arg3[%c0, %c0_3, %c0_4] : memref<1x4x256xf32, #tpu.memory_space<vmem>>, vector<1x4x256xf32>
    %8 = vector.shape_cast %7 : vector<1x4x256xf32> to vector<4x256xf32>
    %c0_5 = arith.constant 0 : index
    %c0_6 = arith.constant 0 : index
    %c0_7 = arith.constant 0 : index
    %9 = vector.load %arg4[%c0_5, %c0_6, %c0_7] : memref<1x1x256xi32, #tpu.memory_space<vmem>>, vector<1x1x256xi32>
    %10 = vector.shape_cast %9 : vector<1x1x256xi32> to vector<1x256xi32>
    %cst_8 = arith.constant dense<0xFF800000> : vector<256xf32>
    %11 = vector.multi_reduction <maximumf>, %8, %cst_8 [0] : vector<4x256xf32> to vector<256xf32>
    %12 = vector.shape_cast %11 : vector<256xf32> to vector<1x256xf32>
    %13 = vector.broadcast %12 : vector<1x256xf32> to vector<4x256xf32>
    %14 = arith.subf %8, %13 : vector<4x256xf32>
    %15 = math.exp %14 : vector<4x256xf32>
    %cst_9 = arith.constant dense<0.000000e+00> : vector<256xf32>
    %16 = vector.multi_reduction <add>, %15, %cst_9 [0] : vector<4x256xf32> to vector<256xf32>
    %17 = vector.shape_cast %16 : vector<256xf32> to vector<1x256xf32>
    %18 = tpu.reciprocal %17 {approx = true} : vector<1x256xf32> -> vector<1x256xf32>
    %19 = arith.mulf %17, %18 : vector<1x256xf32>
    %cst_10 = arith.constant 2.000000e+00 : f32
    %20 = vector.broadcast %cst_10 : f32 to vector<1x256xf32>
    %21 = arith.subf %20, %19 : vector<1x256xf32>
    %22 = arith.mulf %18, %21 : vector<1x256xf32>
    %23 = vector.broadcast %22 : vector<1x256xf32> to vector<4x256xf32>
    %24 = arith.mulf %15, %23 : vector<4x256xf32>
    %25 = vector.broadcast %3 : vector<4x1xi32> to vector<4x256xi32>
    %26 = vector.broadcast %10 : vector<1x256xi32> to vector<4x256xi32>
    %27 = arith.cmpi eq, %25, %26 : vector<4x256xi32>
    %cst_11 = arith.constant 0.000000e+00 : f32
    %28 = vector.broadcast %cst_11 : f32 to vector<4x256xf32>
    %29 = arith.select %27, %14, %28 : vector<4x256xi1>, vector<4x256xf32>
    %cst_12 = arith.constant dense<0.000000e+00> : vector<256xf32>
    %30 = vector.multi_reduction <add>, %29, %cst_12 [0] : vector<4x256xf32> to vector<256xf32>
    %31 = vector.shape_cast %30 : vector<256xf32> to vector<1x256xf32>
    %32 = math.log %17 : vector<1x256xf32>
    %33 = arith.subf %32, %31 : vector<1x256xf32>
    %cst_13 = arith.constant 0.000000e+00 : f32
    %34 = vector.broadcast %cst_13 : f32 to vector<4x256xf32>
    %35 = arith.select %27, %24, %34 : vector<4x256xi1>, vector<4x256xf32>
    %cst_14 = arith.constant 1.000000e+00 : f32
    %36 = vector.broadcast %cst_14 : f32 to vector<4x256xf32>
    %37 = arith.addf %24, %36 : vector<4x256xf32>
    %38 = arith.select %27, %37, %24 : vector<4x256xi1>, vector<4x256xf32>
    %39 = vector.extract_strided_slice %35 {offsets = [0, 0], sizes = [4, 128], strides = [1, 1]} : vector<4x256xf32> to vector<4x128xf32>
    %40 = vector.extract_strided_slice %35 {offsets = [0, 128], sizes = [4, 128], strides = [1, 1]} : vector<4x256xf32> to vector<4x128xf32>
    %41 = arith.addf %39, %40 : vector<4x128xf32>
    %42 = arith.addf %4, %41 : vector<4x128xf32>
    %43 = vector.extract_strided_slice %38 {offsets = [0, 0], sizes = [4, 128], strides = [1, 1]} : vector<4x256xf32> to vector<4x128xf32>
    %44 = vector.extract_strided_slice %38 {offsets = [0, 128], sizes = [4, 128], strides = [1, 1]} : vector<4x256xf32> to vector<4x128xf32>
    %45 = arith.addf %43, %44 : vector<4x128xf32>
    %46 = arith.addf %5, %45 : vector<4x128xf32>
    %47 = vector.extract_strided_slice %33 {offsets = [0, 0], sizes = [1, 128], strides = [1, 1]} : vector<1x256xf32> to vector<1x128xf32>
    %48 = vector.extract_strided_slice %33 {offsets = [0, 128], sizes = [1, 128], strides = [1, 1]} : vector<1x256xf32> to vector<1x128xf32>
    %49 = arith.addf %47, %48 : vector<1x128xf32>
    %50 = arith.addf %6, %49 : vector<1x128xf32>
    %c0_15 = arith.constant 0 : index
    %c0_16 = arith.constant 0 : index
    %c0_17 = arith.constant 0 : index
    %c0_18 = arith.constant 0 : index
    %51 = vector.load %arg5[%c0_15, %c0_16, %c0_17, %c0_18] : memref<1x1x4x128xf32, #tpu.memory_space<vmem>>, vector<1x1x4x128xf32>
    %52 = vector.shape_cast %51 : vector<1x1x4x128xf32> to vector<4x128xf32>
    %53 = arith.addf %52, %42 : vector<4x128xf32>
    %c0_19 = arith.constant 0 : index
    %c0_20 = arith.constant 0 : index
    %c0_21 = arith.constant 0 : index
    %c0_22 = arith.constant 0 : index
    %54 = vector.load %arg5[%c0_19, %c0_20, %c0_21, %c0_22] : memref<1x1x4x128xf32, #tpu.memory_space<vmem>>, vector<1x1x4x128xf32>
    %55 = vector.shape_cast %54 : vector<1x1x4x128xf32> to vector<4x128xf32>
    %56 = vector.shape_cast %53 : vector<4x128xf32> to vector<1x1x4x128xf32>
    tpu.vector_store %arg5[%c0_19, %c0_20, %c0_21, %c0_22], %56 {strides = array<i32>} : memref<1x1x4x128xf32, #tpu.memory_space<vmem>>, vector<1x1x4x128xf32>,
    %c0_23 = arith.constant 0 : index
    %c0_24 = arith.constant 0 : index
    %c0_25 = arith.constant 0 : index
    %c0_26 = arith.constant 0 : index
    %57 = vector.load %arg6[%c0_23, %c0_24, %c0_25, %c0_26] : memref<1x1x4x128xf32, #tpu.memory_space<vmem>>, vector<1x1x4x128xf32>
    %58 = vector.shape_cast %57 : vector<1x1x4x128xf32> to vector<4x128xf32>
    %59 = arith.addf %58, %46 : vector<4x128xf32>
    %c0_27 = arith.constant 0 : index
    %c0_28 = arith.constant 0 : index
    %c0_29 = arith.constant 0 : index
    %c0_30 = arith.constant 0 : index
    %60 = vector.load %arg6[%c0_27, %c0_28, %c0_29, %c0_30] : memref<1x1x4x128xf32, #tpu.memory_space<vmem>>, vector<1x1x4x128xf32>
    %61 = vector.shape_cast %60 : vector<1x1x4x128xf32> to vector<4x128xf32>
    %62 = vector.shape_cast %59 : vector<4x128xf32> to vector<1x1x4x128xf32>
    tpu.vector_store %arg6[%c0_27, %c0_28, %c0_29, %c0_30], %62 {strides = array<i32>} : memref<1x1x4x128xf32, #tpu.memory_space<vmem>>, vector<1x1x4x128xf32>,
    %c0_31 = arith.constant 0 : index
    %c0_32 = arith.constant 0 : index
    %c0_33 = arith.constant 0 : index
    %c0_34 = arith.constant 0 : index
    %63 = vector.load %arg7[%c0_31, %c0_32, %c0_33, %c0_34] : memref<1x1x1x128xf32, #tpu.memory_space<vmem>>, vector<1x1x1x128xf32>
    %64 = vector.shape_cast %63 : vector<1x1x1x128xf32> to vector<1x128xf32>
    %65 = arith.addf %64, %50 : vector<1x128xf32>
    %c0_35 = arith.constant 0 : index
    %c0_36 = arith.constant 0 : index
    %c0_37 = arith.constant 0 : index
    %c0_38 = arith.constant 0 : index
    %66 = vector.load %arg7[%c0_35, %c0_36, %c0_37, %c0_38] : memref<1x1x1x128xf32, #tpu.memory_space<vmem>>, vector<1x1x1x128xf32>
    %67 = vector.shape_cast %66 : vector<1x1x1x128xf32> to vector<1x128xf32>
    %68 = vector.shape_cast %65 : vector<1x128xf32> to vector<1x1x1x128xf32>
    tpu.vector_store %arg7[%c0_35, %c0_36, %c0_37, %c0_38], %68 {strides = array<i32>} : memref<1x1x1x128xf32, #tpu.memory_space<vmem>>, vector<1x1x1x128xf32>,
    return
  }
  func.func @transform_0(%arg0: i32, %arg1: i32, %arg2: i32) -> (i32, i32, i32) {
    %c1_i32 = arith.constant 1 : i32
    %0 = arith.muli %arg0, %c1_i32 : i32
    %1 = arith.addi %0, %arg2 : i32
    %c0_i32 = arith.constant 0 : i32
    %c0_i32_0 = arith.constant 0 : i32
    return %arg1, %c0_i32, %1 : i32, i32, i32
  }
  func.func @transform_1(%arg0: i32, %arg1: i32, %arg2: i32) -> (i32, i32, i32) {
    %c1_i32 = arith.constant 1 : i32
    %0 = arith.muli %arg0, %c1_i32 : i32
    %1 = arith.addi %0, %arg2 : i32
    %c0_i32 = arith.constant 0 : i32
    %c0_i32_0 = arith.constant 0 : i32
    return %arg1, %c0_i32, %1 : i32, i32, i32
  }
  func.func @transform_2(%arg0: i32, %arg1: i32, %arg2: i32) -> (i32, i32, i32, i32) {
    %c0_i32 = arith.constant 0 : i32
    %c0_i32_0 = arith.constant 0 : i32
    %c0_i32_1 = arith.constant 0 : i32
    return %arg0, %arg1, %c0_i32, %c0_i32_0 : i32, i32, i32, i32
  }
  func.func @transform_3(%arg0: i32, %arg1: i32, %arg2: i32) -> (i32, i32, i32, i32) {
    %c0_i32 = arith.constant 0 : i32
    %c0_i32_0 = arith.constant 0 : i32
    %c0_i32_1 = arith.constant 0 : i32
    return %arg0, %arg1, %c0_i32, %c0_i32_0 : i32, i32, i32, i32
  }
  func.func @transform_4(%arg0: i32, %arg1: i32, %arg2: i32) -> (i32, i32, i32, i32) {
    %c0_i32 = arith.constant 0 : i32
    %c0_i32_0 = arith.constant 0 : i32
    %c0_i32_1 = arith.constant 0 : i32
    return %arg0, %arg1, %c0_i32, %c0_i32_0 : i32, i32, i32, i32
  }
}

</mosaic_0001>

<bundles_post_ra>
// kernel: dice_ce_loss.1
= control target key start
LH: loop header
LB: loop body
LE: loop exit
PB: predicated region body
PF: predicated region fallthrough
CT: control target
= control target key end

     0   :  { %s742_s15 = smov 0   ;;  %s744_s16 = smov 0   ;;  %s841_s0 = inlined_call_operand.vmem [shape: f32[2,4,256], index: 0, kind: input, shape index: {}]   ;;  %s842_s1 = inlined_call_operand.vmem [shape: s32[2,1,256], index: 1, kind: input, shape index: {}]   ;;  %s843_s2 = inlined_call_operand.vmem [shape: f32[1,2,4,128], index: 2, kind: output, shape index: {0}]   ;;  %s844_s3 = inlined_call_operand.vmem [shape: f32[1,2,4,128], index: 3, kind: output, shape index: {1}]   ;;  %s845_s4 = inlined_call_operand.vmem [shape: f32[1,2,1,128], index: 4, kind: output, shape index: {2}]  }
   0x1   :  { %s746_s17 = smov 0  }
   0x2 LB: > { %s30_s18 = sadd.s32 1, %s710_s16  ;;  %p647_p0 = scmp.ge.s32.totalorder %s714_s17, 1  ;;  %s714_s17 = sphi %s746_s17, %s15_s17   ;;  %s710_s16 = sphi %s744_s16, %s847_s16   ;;  %s706_s15 = sphi %s742_s15, %s846_s15  }
   0x3   : > { %p32_p1 = scmp.ge.s32.totalorder %s30_s18, 2  ;;  %p223_p2 = scmp.lt.s32.totalorder %s714_s17, 3 }
   0x5   : > { %s849_s18 = smov (%p32_p1, %s30_s18), 0  ;;  %p224_p3 = pnand %p647_p0, %p223_p2 }
   0x6   : > { %p283_p4 = scmp.lt.s32.totalorder (!%p224_p3), %s706_s15, 1 }
   0x7   : > { %227 = sbr.rel (%p224_p3) target bundleno = 101 (0x65), region = 28 }
   0xc   : > { %s851_s15 = smov (!%p283_p4, %s706_s15), 1  ;;  %vm341_vm0 = vcmask 1043456   ;;  %v716_v0 = vmov 0.0   ;;  %v334_v18 = vlaneseq }
   0xd   : > { %s655_s19 = sshll.u32 %s851_s15, 3  ;;  %s651_s20 = sshll.u32 %s851_s15, 2 }
   0xe   : > { %s767_s23 = scalar_lea.vmem %s843_s2, %s651_s20  ;;  %s772_s26 = scalar_lea.vmem %s844_s3, %s651_s20  ;;  %v789_v21 = vshrl.u32 %v334_v18, 7 }
   0xf   : > { %331 = vst [vmem:[%s767_s23] sm:$0xf] %v716_v0  ;;  %332 = vst [vmem:[%s772_s26] sm:$0xf] %v716_v0  ;;  %s780_s29 = scalar_lea.vmem %s845_s4, %s851_s15  ;;  %s290_s6 = scalar_lea.vmem %s841_s0, %s655_s19 }
  0x10   : > { %333 = vst [vmem:[%s780_s29] sm:$0x1] %v716_v0  ;;  %v336_v1 = vld [vmem:[%s290_s6] sm:$0xff]  ;;  %s650_s7 = sshll.u32 %s851_s15, 1  ;;  %v395_v22 = vsub.s32 0, %v789_v21  ;;  %v399_v24 = vsub.s32 1, %v789_v21 }
  0x11   : > { %v339_v2 = vcombine.high %v336_v1, %v336_v1  ;;  %v342_v3 = vsel %vm341_vm0, %v336_v1, -inf  ;;  %s301_s10 = scalar_lea.vmem %s842_s1, %s650_s7 }
  0x12   : > { %v343_v4 = vrot.slane %v342_v3, 4  ;;  %v337_v23 = vld [vmem:[%s301_s10] sm:$0x3] }
  0x13   : > { %v349_v5 = vsel %vm341_vm0, %v339_v2, -inf  ;;  %v796_v25 = vrot.slane %v337_v23, %v395_v22  ;;  %v798_v26 = vrot.slane %v337_v23, %v399_v24 }
  0x14   : > { %v344_v6 = vmax.f32 %v342_v3, %v343_v4  ;;  %v350_v7 = vrot.slane %v349_v5, 4 }
  0x15   : > { %vm401_vm1 = vcmp.eq.s32.totalorder %v789_v21, %v796_v25  ;;  %vm402_vm2 = vcmp.eq.s32.totalorder %v789_v21, %v798_v26 }
  0x16   : > { %v345_v8 = vrot.slane %v344_v6, 2  ;;  %v351_v9 = vmax.f32 %v349_v5, %v350_v7 }
  0x18   : > { %v346_v10 = vmax.f32 %v344_v6, %v345_v8  ;;  %v352_v11 = vrot.slane %v351_v9, 2 }
  0x1a   : > { %v347_v12 = vrot.slane %v346_v10, 1  ;;  %v353_v13 = vmax.f32 %v351_v9, %v352_v11 }
  0x1c   : > { %v348_v14 = vmax.f32 %v346_v10, %v347_v12  ;;  %v354_v15 = vrot.slane %v353_v13, 1  ;;  %v451_v10 = vld [vmem:[%s780_s29] sm:$0x1] }
  0x1e   : > { %v355_v16 = vmax.f32 %v353_v13, %v354_v15 }
  0x20   : > { %v358_v17 = vcombine.low %v348_v14, %v355_v16 }
  0x22   : > { %v360_v19 = vsub.f32 %v336_v1, %v358_v17 }
  0x24   : > { %v361_v20 = vmul.f32 1.442695, %v360_v19  ;;  %v404_v27 = vcombine.high %v360_v19, %v360_v19  ;;  %v406_v31 = vsel %vm401_vm1, %v360_v19, 0.0  ;;  %v445_v19 = vld [vmem:[%s767_s23] sm:$0xf] }
  0x25   : > { %v408_v37 = vsel %vm341_vm0, %v406_v31, 0.0 }
  0x26   : > { %682 = vpow2.f32 %v361_v20  ;;  %v407_v34 = vsel %vm402_vm2, %v404_v27, 0.0  ;;  %v409_v41 = vrot.slane %v408_v37, 4  ;;  %v448_v27 = vld [vmem:[%s772_s26] sm:$0xf] }
  0x27   : > { %v415_v40 = vsel %vm341_vm0, %v407_v34, 0.0 }
  0x28   : > { %v416_v44 = vrot.slane %v415_v40, 4  ;;  %v410_v47 = vadd.f32 %v409_v41, %v408_v37 }
  0x2a   : > { %v417_v50 = vadd.f32 %v416_v44, %v415_v40  ;;  %v411_v52 = vrot.slane %v410_v47, 2 }
  0x2c   : > { %v418_v53 = vrot.slane %v417_v50, 2  ;;  %v412_v54 = vadd.f32 %v411_v52, %v410_v47 }
  0x2e   : > { %v419_v55 = vadd.f32 %v418_v53, %v417_v50  ;;  %v413_v56 = vrot.slane %v412_v54, 1 }
  0x30   : > { %v420_v57 = vrot.slane %v419_v55, 1  ;;  %v414_v59 = vadd.f32 %v413_v56, %v412_v54 }
  0x32   : > { %v421_v63 = vadd.f32 %v420_v57, %v419_v55 }
  0x33   : > { %v683_v28 = vpop.eup %682 }
  0x34   : > { %v364_v29 = vcombine.high %v683_v28, %v683_v28  ;;  %v366_v30 = vsel %vm341_vm0, %v683_v28, 0.0 }
  0x35   : > { %v367_v32 = vrot.slane %v366_v30, 4 }
  0x36   : > { %v373_v33 = vsel %vm341_vm0, %v364_v29, 0.0 }
  0x37   : > { %v368_v35 = vadd.f32 %v367_v32, %v366_v30  ;;  %v374_v36 = vrot.slane %v373_v33, 4 }
  0x39   : > { %v369_v38 = vrot.slane %v368_v35, 2  ;;  %v375_v39 = vadd.f32 %v374_v36, %v373_v33 }
  0x3b   : > { %v370_v42 = vadd.f32 %v369_v38, %v368_v35  ;;  %v376_v43 = vrot.slane %v375_v39, 2 }
  0x3d   : > { %v371_v45 = vrot.slane %v370_v42, 1  ;;  %v377_v46 = vadd.f32 %v376_v43, %v375_v39 }
  0x3f   : > { %v372_v48 = vadd.f32 %v371_v45, %v370_v42  ;;  %v378_v49 = vrot.slane %v377_v46, 1 }
  0x41   : > { %v379_v51 = vadd.f32 %v378_v49, %v377_v46  ;;  %684 = vrcp.f32 %v372_v48 }
  0x42   : > { %686 = vlog2.f32 %v372_v48 }
  0x43   : > { %688 = vrcp.f32 %v379_v51 }
  0x44   : > { %690 = vlog2.f32 %v379_v51 }
  0x4e   : > { %v685_v58 = vpop.eup %684 }
  0x4f   : > { %v687_v60 = vpop.eup %686  ;;  %v382_v61 = vmul.f32 %v685_v58, %v372_v48 }
  0x50   : > { %v689_v62 = vpop.eup %688  ;;  %v423_v0 = vmul.f32 0.6931472, %v687_v60 }
  0x51   : > { %v691_v1 = vpop.eup %690  ;;  %v383_v2 = vmul.f32 %v689_v62, %v379_v51  ;;  %v384_v3 = vsub.f32 2.0, %v382_v61 }
  0x52   : > { %v425_v4 = vmul.f32 0.6931472, %v691_v1  ;;  %v426_v5 = vsub.f32 %v423_v0, %v414_v59 }
  0x53   : > { %v385_v6 = vsub.f32 2.0, %v383_v2  ;;  %v386_v7 = vmul.f32 %v685_v58, %v384_v3 }
  0x54   : > { %v427_v8 = vsub.f32 %v425_v4, %v421_v63 }
  0x55   : > { %v387_v9 = vmul.f32 %v689_v62, %v385_v6 }
  0x56   : > { %v443_v11 = vadd.f32 %v427_v8, %v426_v5 }
  0x57   : > { %v390_v12 = vcombine.low %v386_v7, %v387_v9 }
  0x58   : > { %v452_v13 = vadd.f32 %v451_v10, %v443_v11 }
  0x59   : > { %v392_v14 = vmul.f32 %v683_v28, %v390_v12 }
  0x5a   : > { %453 = vst [vmem:[%s780_s29] sm:$0x1] %v452_v13 }
  0x5b   : > { %v429_v15 = vcombine.high %v392_v14, %v392_v14  ;;  %v431_v16 = vsel %vm401_vm1, %v392_v14, 0.0  ;;  %v433_v17 = vadd.f32 1.0, %v392_v14 }
  0x5d   : > { %v432_v18 = vsel %vm402_vm2, %v429_v15, 0.0  ;;  %v435_v20 = vcombine.high %v433_v17, %v433_v17  ;;  %v437_v22 = vsel %vm401_vm1, %v433_v17, %v392_v14 }
  0x5e   : > { %v439_v23 = vadd.f32 %v432_v18, %v431_v16 }
  0x5f   : > { %v438_v24 = vsel %vm402_vm2, %v435_v20, %v429_v15 }
  0x60   : > { %v446_v28 = vadd.f32 %v445_v19, %v439_v23  ;;  %v441_v29 = vadd.f32 %v438_v24, %v437_v22 }
  0x62   : > { %447 = vst [vmem:[%s767_s23] sm:$0xf] %v446_v28  ;;  %v449_v30 = vadd.f32 %v448_v27, %v441_v29 }
  0x64   : > { %450 = vst [vmem:[%s772_s26] sm:$0xf] %v449_v30 }
  0x65 PF: > { %s15_s17 = sadd.s32 1, %s714_s17   ;;  %s846_s15 = smov %s710_s16 }
  0x66   : > { %p12_p5 = scmp.ge.s32.totalorder %s15_s17, 4   ;;  %s847_s16 = smov %s849_s18 }
  0x68   :  { %14 = sbr.rel (!%p12_p5) target bundleno = 2 (0x2), region = 89 }

</bundles_post_ra>
